<compile_context>
chip_gen: v7x
topology: tpu7x:2x2x1
jax: 0.10.0
libtpu: 0.0.40
codegen_flags: <defaults>
</compile_context>

<pallas_src>
import functools
import math

import jax
import jax.numpy as jnp
from jax.experimental import pallas as pl
from jax.experimental.pallas import tpu as pltpu

BN_EPS = 1e-5


# --------------------------------------------------------------------------------------
# Pass 1: BatchNorm batch statistics -> packed (scale, shift), exact over the full batch.
# --------------------------------------------------------------------------------------
def bn_stats_kernel(x_ref, w_ref, gb_ref, affine_ref, sum_ref, sq_ref):
    i = pl.program_id(0)
    # Linear output WITHOUT bias: the bias shifts mean and h equally, so it cancels in BN.
    h = jnp.dot(x_ref[...], w_ref[...], preferred_element_type=jnp.float32)  # (tb, h2)

    @pl.when(i == 0)
    def _():
        sum_ref[...] = jnp.zeros_like(sum_ref)
        sq_ref[...] = jnp.zeros_like(sq_ref)

    sum_ref[...] += jnp.sum(h, axis=0, keepdims=True)
    sq_ref[...] += jnp.sum(h * h, axis=0, keepdims=True)

    @pl.when(i == pl.num_programs(0) - 1)
    def _():
        inv_n = 1.0 / (h.shape[0] * pl.num_programs(0))
        mean = sum_ref[...] * inv_n
        var = jnp.maximum(sq_ref[...] * inv_n - mean * mean, 0.0)  # biased var (training BN)
        scale = gb_ref[0:1, :] * jax.lax.rsqrt(var + BN_EPS)
        shift = gb_ref[1:2, :] - mean * scale
        affine_ref[0:1, :] = scale
        affine_ref[1:2, :] = shift


# --------------------------------------------------------------------------------------
# Pass 2: fused embedding + final projection, tiled over batch (parallel axis).
# --------------------------------------------------------------------------------------
def fused_embed_kernel(idx_a_ref, idx_b_ref, x_ref,
                       fused_a_ref, fused_b_ref,
                       w_num_ref, wf_n_ref, affine_ref, b_fin_ref,
                       out_ref):
    f32 = jnp.float32

    def onehot_matmul(idx, tab_ref):
        # Embedding gather constant-folded with the final projection slice:
        #   onehot(idx) @ (table @ W_fin_slice)
        # One-hot entries (0/1) are exact in bf16, so this is exact row selection.
        n_rows = tab_ref.shape[0]
        iota = jax.lax.broadcasted_iota(jnp.int32, (idx.shape[0], n_rows), 1)
        onehot = (idx == iota).astype(tab_ref.dtype)
        return jnp.dot(onehot, tab_ref[...], preferred_element_type=f32)

    acc = onehot_matmul(idx_a_ref[...], fused_a_ref)              # (tb, E)
    acc = acc + onehot_matmul(idx_b_ref[...], fused_b_ref)        # (tb, E)

    # Numerical embedding: Linear (bias + BatchNorm folded into affine) + projection slice.
    h_lin = jnp.dot(x_ref[...], w_num_ref[...], preferred_element_type=f32)  # (tb, h2)
    h_n = h_lin * affine_ref[0:1, :] + affine_ref[1:2, :]
    acc = acc + jnp.dot(h_n, wf_n_ref[...], preferred_element_type=f32)

    out_ref[...] = (acc + b_fin_ref[...]).astype(out_ref.dtype)


# --------------------------------------------------------------------------------------
# Wrapper
# --------------------------------------------------------------------------------------
def multi_feature_embedding(idx_a, idx_b, x_num, params, *, block_b=8):
    B = idx_a.shape[0]
    D = x_num.shape[1]
    h2 = params["w_num_t"].shape[1]
    E = params["b_fin"].shape[-1]
    Ca = params["fused_a"].shape[0]
    Cb = params["fused_b"].shape[0]

    # Clamp indices (torch Embedding would error on OOB; one-hot would silently zero).
    idx_a = jnp.clip(idx_a.astype(jnp.int32), 0, Ca - 1)
    idx_b = jnp.clip(idx_b.astype(jnp.int32), 0, Cb - 1)

    tb = min(block_b, B)
    assert B % tb == 0, "batch must be divisible by the batch tile"
    nb = B // tb

    # ---- pass 1: BN statistics over the FULL batch (matches torch batch-stat BN) ----
    if B > 1:
        affine = pl.pallas_call(
            bn_stats_kernel,
            out_shape=jax.ShapeDtypeStruct((2, h2), jnp.float32),
            grid_spec=pltpu.PrefetchScalarGridSpec(
                num_scalar_prefetch=0,
                grid=(nb,),
                in_specs=[
                    pl.BlockSpec((tb, D), lambda i: (i, 0)),    # x_num tile
                    pl.BlockSpec((D, h2), lambda i: (0, 0)),    # w_num (resident)
                    pl.BlockSpec((2, h2), lambda i: (0, 0)),    # packed (gamma, beta)
                ],
                out_specs=pl.BlockSpec((2, h2), lambda i: (0, 0)),
                scratch_shapes=[pltpu.VMEM((1, h2), jnp.float32),
                                pltpu.VMEM((1, h2), jnp.float32)],
            ),
            compiler_params=pltpu.CompilerParams(
                dimension_semantics=("arbitrary",)),            # batch reduction
        )(x_num, params["w_num_t"], params["bn_gb"])
    else:
        # BatchNorm skipped when batch has a single row: identity scale, bias as shift.
        affine = jnp.concatenate(
            [jnp.ones((1, h2), jnp.float32), params["b_num"]], axis=0)

    # ---- pass 2: fused embedding + projection, parallel over batch tiles ----
    flops = 2 * B * (Ca * E + Cb * E + D * h2 + h2 * E)
    bytes_accessed = (2 * B * 4                      # idx_a, idx_b (int32)
                      + B * D * 4                    # x_num
                      + (Ca + Cb) * E * 2            # bf16 fused tables
                      + D * h2 * 4 + h2 * E * 4      # w_num_t, wf_n_t
                      + 2 * h2 * 4 + E * 4           # affine, b_fin
                      + B * E * 4)                   # output

    out = pl.pallas_call(
        fused_embed_kernel,
        out_shape=jax.ShapeDtypeStruct((B, E), jnp.float32),
        grid_spec=pltpu.PrefetchScalarGridSpec(
            num_scalar_prefetch=0,
            grid=(nb,),
            in_specs=[
                pl.BlockSpec((tb, 1), lambda i: (i, 0)),        # idx_a tile
                pl.BlockSpec((tb, 1), lambda i: (i, 0)),        # idx_b tile
                pl.BlockSpec((tb, D), lambda i: (i, 0)),        # x_num tile
                pl.BlockSpec((Ca, E), lambda i: (0, 0)),        # fused table a (resident)
                pl.BlockSpec((Cb, E), lambda i: (0, 0)),        # fused table b (resident)
                pl.BlockSpec((D, h2), lambda i: (0, 0)),        # w_num_t (resident)
                pl.BlockSpec((h2, E), lambda i: (0, 0)),        # wf_n_t (resident)
                pl.BlockSpec((2, h2), lambda i: (0, 0)),        # packed (scale, shift)
                pl.BlockSpec((1, E), lambda i: (0, 0)),         # b_fin
            ],
            out_specs=pl.BlockSpec((tb, E), lambda i: (i, 0)),
        ),
        compiler_params=pltpu.CompilerParams(
            dimension_semantics=("parallel",)),                 # megacore-shardable
        cost_estimate=pl.CostEstimate(
            flops=flops, transcendentals=0, bytes_accessed=bytes_accessed),
    )(idx_a, idx_b, x_num, params["fused_a"], params["fused_b"],
      params["w_num_t"], params["wf_n_t"], affine, params["b_fin"])
    return out


# --------------------------------------------------------------------------------------
# Params / reference
# --------------------------------------------------------------------------------------
def _xavier_uniform(key, shape):
    # torch xavier_uniform_ on a 2-D tensor: fan_out = shape[0], fan_in = shape[1]
    bound = math.sqrt(6.0 / (shape[0] + shape[1]))
    return jax.random.uniform(key, shape, jnp.float32, -bound, bound)


def init_params(key, cat_configs, numerical_dim, embedding_dim):
    (ca_cats, ca_dim), (cb_cats, cb_dim) = cat_configs
    h2 = embedding_dim // 2
    total = ca_dim + cb_dim + h2
    ks = jax.random.split(key, 4)

    tab_a = _xavier_uniform(ks[0], (ca_cats, ca_dim))
    tab_b = _xavier_uniform(ks[1], (cb_cats, cb_dim))
    w_num = _xavier_uniform(ks[2], (h2, numerical_dim))         # torch Linear: [out, in]
    w_fin = _xavier_uniform(ks[3], (embedding_dim, total))      # torch Linear: [out, in]

    w_fin_t = w_fin.T                                           # [total, E]
    # Constant-fold embedding tables into the final projection (wrapper-side, free).
    fused_a = (tab_a @ w_fin_t[:ca_dim, :]).astype(jnp.bfloat16)            # [C_a, E]
    fused_b = (tab_b @ w_fin_t[ca_dim:ca_dim + cb_dim, :]).astype(jnp.bfloat16)  # [C_b, E]

    return {
        "fused_a": fused_a,
        "fused_b": fused_b,
        "w_num_t": w_num.T,                                     # [numerical_dim, h2]
        "b_num": jnp.zeros((1, h2), jnp.float32),
        "bn_gb": jnp.concatenate([jnp.ones((1, h2), jnp.float32),
                                  jnp.zeros((1, h2), jnp.float32)], axis=0),  # gamma;beta
        "wf_n_t": w_fin_t[ca_dim + cb_dim:, :],                 # [h2, E]
        "b_fin": jnp.zeros((1, embedding_dim), jnp.float32),
    }


def reference_forward(idx_a, idx_b, x_num, p):
    # Pure-JAX reference of the module forward (with the table->projection fold,
    # using the same stored parameters as the kernel).
    f32 = jnp.float32
    e_a = p["fused_a"].astype(f32)[idx_a[:, 0]]
    e_b = p["fused_b"].astype(f32)[idx_b[:, 0]]
    h = x_num @ p["w_num_t"] + p["b_num"]
    if h.shape[0] > 1:
        gamma, beta = p["bn_gb"][0:1, :], p["bn_gb"][1:2, :]
        mean = jnp.mean(h, axis=0, keepdims=True)
        var = jnp.mean((h - mean) ** 2, axis=0, keepdims=True)  # biased var (training BN)
        h = (h - mean) * jax.lax.rsqrt(var + BN_EPS) * gamma + beta
    return e_a + e_b + h @ p["wf_n_t"] + p["b_fin"]


if __name__ == "__main__":
    # Module config: categorical_configs = {"cat_a": (16, 8), "cat_b": (32, 16)},
    #                numerical_dim = 4, embedding_dim = 32
    B = 16                       # 2 batch tiles of 8 rows -> exercises both grids
    cat_configs = ((16, 8), (32, 16))
    numerical_dim = 4
    embedding_dim = 32

    key = jax.random.PRNGKey(0)
    kp, ka, kb, kn = jax.random.split(key, 4)
    params = init_params(kp, cat_configs, numerical_dim, embedding_dim)

    idx_a = jax.random.randint(ka, (B, 1), 0, cat_configs[0][0], dtype=jnp.int32)
    idx_b = jax.random.randint(kb, (B, 1), 0, cat_configs[1][0], dtype=jnp.int32)
    x_num = jax.random.normal(kn, (B, numerical_dim), jnp.float32)

    fwd = jax.jit(functools.partial(multi_feature_embedding, block_b=8))
    out = jax.block_until_ready(fwd(idx_a, idx_b, x_num, params))

    ref = reference_forward(idx_a, idx_b, x_num, params)
    assert out.shape == (B, embedding_dim)
    assert jnp.allclose(out, ref, rtol=1e-4, atol=1e-4), "mismatch vs reference"
    print("KERNEL_OK")
</pallas_src>

<mosaic_0001>
module attributes {stable_mosaic.version = 11 : i64} {
  func.func @bn_stats_kernel(%arg0: i32, %arg1: memref<8x4xf32, #tpu.memory_space<vmem>>, %arg2: memref<4x16xf32, #tpu.memory_space<vmem>>, %arg3: memref<2x16xf32, #tpu.memory_space<vmem>>, %arg4: memref<2x16xf32, #tpu.memory_space<vmem>>, %arg5: memref<1x16xf32, #tpu.memory_space<vmem>>, %arg6: memref<1x16xf32, #tpu.memory_space<vmem>>) attributes {dimension_semantics = [#tpu.dimension_semantics<arbitrary>], iteration_bounds = array<i64: 2>, scalar_prefetch = 0 : i64, scratch_operands = 2 : i64, tpu.core_type = #tpu.core_type<tc>, window_params = [{transform_indices = @transform_0, window_bounds = array<i64: 8, 4>}, {pipeline_mode = #tpu.pipeline_mode<synchronous>, transform_indices = @transform_1, window_bounds = array<i64: 4, 16>}, {pipeline_mode = #tpu.pipeline_mode<synchronous>, transform_indices = @transform_2, window_bounds = array<i64: 2, 16>}, {pipeline_mode = #tpu.pipeline_mode<synchronous>, transform_indices = @transform_3, window_bounds = array<i64: 2, 16>}]} {
    %c0 = arith.constant 0 : index
    %c0_0 = arith.constant 0 : index
    %0 = vector.load %arg1[%c0, %c0_0] : memref<8x4xf32, #tpu.memory_space<vmem>>, vector<8x4xf32>
    %c0_1 = arith.constant 0 : index
    %c0_2 = arith.constant 0 : index
    %1 = vector.load %arg2[%c0_1, %c0_2] : memref<4x16xf32, #tpu.memory_space<vmem>>, vector<4x16xf32>
    %cst = arith.constant dense<0.000000e+00> : vector<8x16xf32>
    %2 = tpu.matmul %0, %1, %cst {dimension_numbers = #tpu.dot_dimension_numbers<[1], [0], [0], [1], [0, 0, 1, 1], [], []>} : vector<8x4xf32>, vector<4x16xf32>, vector<8x16xf32> -> vector<8x16xf32>
    %c0_i32 = arith.constant 0 : i32
    %3 = arith.cmpi eq, %arg0, %c0_i32 : i32
    %4 = arith.extui %3 : i1 to i32
    %c0_i32_3 = arith.constant 0 : i32
    %5 = arith.cmpi ne, %4, %c0_i32_3 : i32
    scf.if %5 {
      %cst_15 = arith.constant 0.000000e+00 : f32
      %20 = vector.broadcast %cst_15 : f32 to vector<1x16xf32>
      %c0_16 = arith.constant 0 : index
      %c0_17 = arith.constant 0 : index
      %21 = vector.load %arg5[%c0_16, %c0_17] : memref<1x16xf32, #tpu.memory_space<vmem>>, vector<1x16xf32>
      tpu.vector_store %arg5[%c0_16, %c0_17], %20 {strides = array<i32>} : memref<1x16xf32, #tpu.memory_space<vmem>>, vector<1x16xf32>,
      %cst_18 = arith.constant 0.000000e+00 : f32
      %22 = vector.broadcast %cst_18 : f32 to vector<1x16xf32>
      %c0_19 = arith.constant 0 : index
      %c0_20 = arith.constant 0 : index
      %23 = vector.load %arg6[%c0_19, %c0_20] : memref<1x16xf32, #tpu.memory_space<vmem>>, vector<1x16xf32>
      tpu.vector_store %arg6[%c0_19, %c0_20], %22 {strides = array<i32>} : memref<1x16xf32, #tpu.memory_space<vmem>>, vector<1x16xf32>,
    } else {
    }
    %c0_4 = arith.constant 0 : index
    %c0_5 = arith.constant 0 : index
    %6 = vector.load %arg5[%c0_4, %c0_5] : memref<1x16xf32, #tpu.memory_space<vmem>>, vector<1x16xf32>
    %cst_6 = arith.constant dense<0.000000e+00> : vector<16xf32>
    %7 = vector.multi_reduction <add>, %2, %cst_6 [0] : vector<8x16xf32> to vector<16xf32>
    %8 = vector.shape_cast %7 : vector<16xf32> to vector<1x16xf32>
    %9 = arith.addf %6, %8 : vector<1x16xf32>
    %c0_7 = arith.constant 0 : index
    %c0_8 = arith.constant 0 : index
    %10 = vector.load %arg5[%c0_7, %c0_8] : memref<1x16xf32, #tpu.memory_space<vmem>>, vector<1x16xf32>
    tpu.vector_store %arg5[%c0_7, %c0_8], %9 {strides = array<i32>} : memref<1x16xf32, #tpu.memory_space<vmem>>, vector<1x16xf32>,
    %c0_9 = arith.constant 0 : index
    %c0_10 = arith.constant 0 : index
    %11 = vector.load %arg6[%c0_9, %c0_10] : memref<1x16xf32, #tpu.memory_space<vmem>>, vector<1x16xf32>
    %12 = arith.mulf %2, %2 : vector<8x16xf32>
    %cst_11 = arith.constant dense<0.000000e+00> : vector<16xf32>
    %13 = vector.multi_reduction <add>, %12, %cst_11 [0] : vector<8x16xf32> to vector<16xf32>
    %14 = vector.shape_cast %13 : vector<16xf32> to vector<1x16xf32>
    %15 = arith.addf %11, %14 : vector<1x16xf32>
    %c0_12 = arith.constant 0 : index
    %c0_13 = arith.constant 0 : index
    %16 = vector.load %arg6[%c0_12, %c0_13] : memref<1x16xf32, #tpu.memory_space<vmem>>, vector<1x16xf32>
    tpu.vector_store %arg6[%c0_12, %c0_13], %15 {strides = array<i32>} : memref<1x16xf32, #tpu.memory_space<vmem>>, vector<1x16xf32>,
    %c1_i32 = arith.constant 1 : i32
    %17 = arith.cmpi eq, %arg0, %c1_i32 : i32
    %18 = arith.extui %17 : i1 to i32
    %c0_i32_14 = arith.constant 0 : i32
    %19 = arith.cmpi ne, %18, %c0_i32_14 : i32
    scf.if %19 {
      %c0_15 = arith.constant 0 : index
      %c0_16 = arith.constant 0 : index
      %20 = vector.load %arg5[%c0_15, %c0_16] : memref<1x16xf32, #tpu.memory_space<vmem>>, vector<1x16xf32>
      %cst_17 = arith.constant 6.250000e-02 : f32
      %21 = vector.broadcast %cst_17 : f32 to vector<1x16xf32>
      %22 = arith.mulf %20, %21 : vector<1x16xf32>
      %c0_18 = arith.constant 0 : index
      %c0_19 = arith.constant 0 : index
      %23 = vector.load %arg6[%c0_18, %c0_19] : memref<1x16xf32, #tpu.memory_space<vmem>>, vector<1x16xf32>
      %cst_20 = arith.constant 6.250000e-02 : f32
      %24 = vector.broadcast %cst_20 : f32 to vector<1x16xf32>
      %25 = arith.mulf %23, %24 : vector<1x16xf32>
      %26 = arith.mulf %22, %22 : vector<1x16xf32>
      %27 = arith.subf %25, %26 : vector<1x16xf32>
      %cst_21 = arith.constant 0.000000e+00 : f32
      %28 = vector.broadcast %cst_21 : f32 to vector<1x16xf32>
      %29 = arith.maximumf %27, %28 : vector<1x16xf32>
      %c0_22 = arith.constant 0 : index
      %c0_23 = arith.constant 0 : index
      %30 = vector.load %arg3[%c0_22, %c0_23] : memref<2x16xf32, #tpu.memory_space<vmem>>, vector<1x16xf32>
      %cst_24 = arith.constant 9.99999974E-6 : f32
      %31 = vector.broadcast %cst_24 : f32 to vector<1x16xf32>
      %32 = arith.addf %29, %31 : vector<1x16xf32>
      %33 = math.rsqrt %32 : vector<1x16xf32>
      %34 = arith.mulf %30, %33 : vector<1x16xf32>
      %c1 = arith.constant 1 : index
      %c0_25 = arith.constant 0 : index
      %35 = vector.load %arg3[%c1, %c0_25] : memref<2x16xf32, #tpu.memory_space<vmem>>, vector<1x16xf32>
      %36 = arith.mulf %22, %34 : vector<1x16xf32>
      %37 = arith.subf %35, %36 : vector<1x16xf32>
      %c0_26 = arith.constant 0 : index
      %c0_27 = arith.constant 0 : index
      %38 = vector.load %arg4[%c0_26, %c0_27] : memref<2x16xf32, #tpu.memory_space<vmem>>, vector<1x16xf32>
      tpu.vector_store %arg4[%c0_26, %c0_27], %34 {strides = array<i32>} : memref<2x16xf32, #tpu.memory_space<vmem>>, vector<1x16xf32>,
      %c1_28 = arith.constant 1 : index
      %c0_29 = arith.constant 0 : index
      %39 = vector.load %arg4[%c1_28, %c0_29] : memref<2x16xf32, #tpu.memory_space<vmem>>, vector<1x16xf32>
      tpu.vector_store %arg4[%c1_28, %c0_29], %37 {strides = array<i32>} : memref<2x16xf32, #tpu.memory_space<vmem>>, vector<1x16xf32>,
    } else {
    }
    return
  }
  func.func @transform_0(%arg0: i32) -> (i32, i32) {
    %c0_i32 = arith.constant 0 : i32
    %c0_i32_0 = arith.constant 0 : i32
    return %arg0, %c0_i32 : i32, i32
  }
  func.func @transform_1(%arg0: i32) -> (i32, i32) {
    %c0_i32 = arith.constant 0 : i32
    %c0_i32_0 = arith.constant 0 : i32
    %c0_i32_1 = arith.constant 0 : i32
    return %c0_i32, %c0_i32_0 : i32, i32
  }
  func.func @transform_2(%arg0: i32) -> (i32, i32) {
    %c0_i32 = arith.constant 0 : i32
    %c0_i32_0 = arith.constant 0 : i32
    %c0_i32_1 = arith.constant 0 : i32
    return %c0_i32, %c0_i32_0 : i32, i32
  }
  func.func @transform_3(%arg0: i32) -> (i32, i32) {
    %c0_i32 = arith.constant 0 : i32
    %c0_i32_0 = arith.constant 0 : i32
    %c0_i32_1 = arith.constant 0 : i32
    return %c0_i32, %c0_i32_0 : i32, i32
  }
}

module attributes {stable_mosaic.version = 11 : i64} {
  func.func @fused_embed_kernel(%arg0: i32, %arg1: memref<8x1xi32, #tpu.memory_space<vmem>>, %arg2: memref<8x1xi32, #tpu.memory_space<vmem>>, %arg3: memref<8x4xf32, #tpu.memory_space<vmem>>, %arg4: memref<16x32xbf16, #tpu.memory_space<vmem>>, %arg5: memref<32x32xbf16, #tpu.memory_space<vmem>>, %arg6: memref<4x16xf32, #tpu.memory_space<vmem>>, %arg7: memref<16x32xf32, #tpu.memory_space<vmem>>, %arg8: memref<2x16xf32, #tpu.memory_space<vmem>>, %arg9: memref<1x32xf32, #tpu.memory_space<vmem>>, %arg10: memref<8x32xf32, #tpu.memory_space<vmem>>) attributes {dimension_semantics = [#tpu.dimension_semantics<parallel>], iteration_bounds = array<i64: 2>, scalar_prefetch = 0 : i64, scratch_operands = 0 : i64, tpu.core_type = #tpu.core_type<tc>, window_params = [{transform_indices = @transform_0, window_bounds = array<i64: 8, 1>}, {transform_indices = @transform_1, window_bounds = array<i64: 8, 1>}, {transform_indices = @transform_2, window_bounds = array<i64: 8, 4>}, {pipeline_mode = #tpu.pipeline_mode<synchronous>, transform_indices = @transform_3, window_bounds = array<i64: 16, 32>}, {pipeline_mode = #tpu.pipeline_mode<synchronous>, transform_indices = @transform_4, window_bounds = array<i64: 32, 32>}, {pipeline_mode = #tpu.pipeline_mode<synchronous>, transform_indices = @transform_5, window_bounds = array<i64: 4, 16>}, {pipeline_mode = #tpu.pipeline_mode<synchronous>, transform_indices = @transform_6, window_bounds = array<i64: 16, 32>}, {pipeline_mode = #tpu.pipeline_mode<synchronous>, transform_indices = @transform_7, window_bounds = array<i64: 2, 16>}, {pipeline_mode = #tpu.pipeline_mode<synchronous>, transform_indices = @transform_8, window_bounds = array<i64: 1, 32>}, {transform_indices = @transform_9, window_bounds = array<i64: 8, 32>}]} {
    %c0 = arith.constant 0 : index
    %c0_0 = arith.constant 0 : index
    %0 = vector.load %arg1[%c0, %c0_0] : memref<8x1xi32, #tpu.memory_space<vmem>>, vector<8x1xi32>
    %1 = tpu.iota {dimensions = array<i32: 1>} : vector<8x16xi32>
    %2 = vector.broadcast %0 : vector<8x1xi32> to vector<8x16xi32>
    %3 = arith.cmpi eq, %2, %1 : vector<8x16xi32>
    %4 = arith.extui %3 : vector<8x16xi1> to vector<8x16xi32>
    %5 = arith.sitofp %4 : vector<8x16xi32> to vector<8x16xf32>
    %6 = arith.truncf %5 : vector<8x16xf32> to vector<8x16xbf16>
    %c0_1 = arith.constant 0 : index
    %c0_2 = arith.constant 0 : index
    %7 = vector.load %arg4[%c0_1, %c0_2] : memref<16x32xbf16, #tpu.memory_space<vmem>>, vector<16x32xbf16>
    %cst = arith.constant dense<0.000000e+00> : vector<8x32xf32>
    %8 = tpu.matmul %6, %7, %cst {dimension_numbers = #tpu.dot_dimension_numbers<[1], [0], [0], [1], [0, 0, 1, 1], [], []>} : vector<8x16xbf16>, vector<16x32xbf16>, vector<8x32xf32> -> vector<8x32xf32>
    %c0_3 = arith.constant 0 : index
    %c0_4 = arith.constant 0 : index
    %9 = vector.load %arg2[%c0_3, %c0_4] : memref<8x1xi32, #tpu.memory_space<vmem>>, vector<8x1xi32>
    %10 = tpu.iota {dimensions = array<i32: 1>} : vector<8x32xi32>
    %11 = vector.broadcast %9 : vector<8x1xi32> to vector<8x32xi32>
    %12 = arith.cmpi eq, %11, %10 : vector<8x32xi32>
    %13 = arith.extui %12 : vector<8x32xi1> to vector<8x32xi32>
    %14 = arith.sitofp %13 : vector<8x32xi32> to vector<8x32xf32>
    %15 = arith.truncf %14 : vector<8x32xf32> to vector<8x32xbf16>
    %c0_5 = arith.constant 0 : index
    %c0_6 = arith.constant 0 : index
    %16 = vector.load %arg5[%c0_5, %c0_6] : memref<32x32xbf16, #tpu.memory_space<vmem>>, vector<32x32xbf16>
    %cst_7 = arith.constant dense<0.000000e+00> : vector<8x32xf32>
    %17 = tpu.matmul %15, %16, %cst_7 {dimension_numbers = #tpu.dot_dimension_numbers<[1], [0], [0], [1], [0, 0, 1, 1], [], []>} : vector<8x32xbf16>, vector<32x32xbf16>, vector<8x32xf32> -> vector<8x32xf32>
    %18 = arith.addf %8, %17 : vector<8x32xf32>
    %c0_8 = arith.constant 0 : index
    %c0_9 = arith.constant 0 : index
    %19 = vector.load %arg3[%c0_8, %c0_9] : memref<8x4xf32, #tpu.memory_space<vmem>>, vector<8x4xf32>
    %c0_10 = arith.constant 0 : index
    %c0_11 = arith.constant 0 : index
    %20 = vector.load %arg6[%c0_10, %c0_11] : memref<4x16xf32, #tpu.memory_space<vmem>>, vector<4x16xf32>
    %cst_12 = arith.constant dense<0.000000e+00> : vector<8x16xf32>
    %21 = tpu.matmul %19, %20, %cst_12 {dimension_numbers = #tpu.dot_dimension_numbers<[1], [0], [0], [1], [0, 0, 1, 1], [], []>} : vector<8x4xf32>, vector<4x16xf32>, vector<8x16xf32> -> vector<8x16xf32>
    %c0_13 = arith.constant 0 : index
    %c0_14 = arith.constant 0 : index
    %22 = vector.load %arg8[%c0_13, %c0_14] : memref<2x16xf32, #tpu.memory_space<vmem>>, vector<1x16xf32>
    %23 = vector.broadcast %22 : vector<1x16xf32> to vector<8x16xf32>
    %24 = arith.mulf %21, %23 : vector<8x16xf32>
    %c1 = arith.constant 1 : index
    %c0_15 = arith.constant 0 : index
    %25 = vector.load %arg8[%c1, %c0_15] : memref<2x16xf32, #tpu.memory_space<vmem>>, vector<1x16xf32>
    %26 = vector.broadcast %25 : vector<1x16xf32> to vector<8x16xf32>
    %27 = arith.addf %24, %26 : vector<8x16xf32>
    %c0_16 = arith.constant 0 : index
    %c0_17 = arith.constant 0 : index
    %28 = vector.load %arg7[%c0_16, %c0_17] : memref<16x32xf32, #tpu.memory_space<vmem>>, vector<16x32xf32>
    %cst_18 = arith.constant dense<0.000000e+00> : vector<8x32xf32>
    %29 = tpu.matmul %27, %28, %cst_18 {dimension_numbers = #tpu.dot_dimension_numbers<[1], [0], [0], [1], [0, 0, 1, 1], [], []>} : vector<8x16xf32>, vector<16x32xf32>, vector<8x32xf32> -> vector<8x32xf32>
    %30 = arith.addf %18, %29 : vector<8x32xf32>
    %c0_19 = arith.constant 0 : index
    %c0_20 = arith.constant 0 : index
    %31 = vector.load %arg9[%c0_19, %c0_20] : memref<1x32xf32, #tpu.memory_space<vmem>>, vector<1x32xf32>
    %32 = vector.broadcast %31 : vector<1x32xf32> to vector<8x32xf32>
    %33 = arith.addf %30, %32 : vector<8x32xf32>
    %c0_21 = arith.constant 0 : index
    %c0_22 = arith.constant 0 : index
    %34 = vector.load %arg10[%c0_21, %c0_22] : memref<8x32xf32, #tpu.memory_space<vmem>>, vector<8x32xf32>
    tpu.vector_store %arg10[%c0_21, %c0_22], %33 {strides = array<i32>} : memref<8x32xf32, #tpu.memory_space<vmem>>, vector<8x32xf32>,
    return
  }
  func.func @transform_0(%arg0: i32) -> (i32, i32) {
    %c0_i32 = arith.constant 0 : i32
    %c0_i32_0 = arith.constant 0 : i32
    return %arg0, %c0_i32 : i32, i32
  }
  func.func @transform_1(%arg0: i32) -> (i32, i32) {
    %c0_i32 = arith.constant 0 : i32
    %c0_i32_0 = arith.constant 0 : i32
    return %arg0, %c0_i32 : i32, i32
  }
  func.func @transform_2(%arg0: i32) -> (i32, i32) {
    %c0_i32 = arith.constant 0 : i32
    %c0_i32_0 = arith.constant 0 : i32
    return %arg0, %c0_i32 : i32, i32
  }
  func.func @transform_3(%arg0: i32) -> (i32, i32) {
    %c0_i32 = arith.constant 0 : i32
    %c0_i32_0 = arith.constant 0 : i32
    %c0_i32_1 = arith.constant 0 : i32
    return %c0_i32, %c0_i32_0 : i32, i32
  }
  func.func @transform_4(%arg0: i32) -> (i32, i32) {
    %c0_i32 = arith.constant 0 : i32
    %c0_i32_0 = arith.constant 0 : i32
    %c0_i32_1 = arith.constant 0 : i32
    return %c0_i32, %c0_i32_0 : i32, i32
  }
  func.func @transform_5(%arg0: i32) -> (i32, i32) {
    %c0_i32 = arith.constant 0 : i32
    %c0_i32_0 = arith.constant 0 : i32
    %c0_i32_1 = arith.constant 0 : i32
    return %c0_i32, %c0_i32_0 : i32, i32
  }
  func.func @transform_6(%arg0: i32) -> (i32, i32) {
    %c0_i32 = arith.constant 0 : i32
    %c0_i32_0 = arith.constant 0 : i32
    %c0_i32_1 = arith.constant 0 : i32
    return %c0_i32, %c0_i32_0 : i32, i32
  }
  func.func @transform_7(%arg0: i32) -> (i32, i32) {
    %c0_i32 = arith.constant 0 : i32
    %c0_i32_0 = arith.constant 0 : i32
    %c0_i32_1 = arith.constant 0 : i32
    return %c0_i32, %c0_i32_0 : i32, i32
  }
  func.func @transform_8(%arg0: i32) -> (i32, i32) {
    %c0_i32 = arith.constant 0 : i32
    %c0_i32_0 = arith.constant 0 : i32
    %c0_i32_1 = arith.constant 0 : i32
    return %c0_i32, %c0_i32_0 : i32, i32
  }
  func.func @transform_9(%arg0: i32) -> (i32, i32) {
    %c0_i32 = arith.constant 0 : i32
    %c0_i32_0 = arith.constant 0 : i32
    return %arg0, %c0_i32 : i32, i32
  }
}

</mosaic_0001>

<bundles_post_ra>
// kernel: multi_feature_embedding.2
= control target key start
LH: loop header
LB: loop body
LE: loop exit
PB: predicated region body
PF: predicated region fallthrough
CT: control target
= control target key end

     0   :  { %s373_s12 = smov 0   ;;  %s412_s0 = inlined_call_operand.vmem [shape: f32[16,4], index: 0, kind: input, shape index: {}]   ;;  %s413_s1 = inlined_call_operand.vmem [shape: f32[4,16], index: 1, kind: input, shape index: {}]   ;;  %s414_s2 = inlined_call_operand.vmem [shape: f32[2,16], index: 2, kind: input, shape index: {}]   ;;  %s415_s3 = inlined_call_operand.vmem [shape: f32[2,16], index: 3, kind: output, shape index: {}]  }
   0x1 LB: > { %s379_s13 = sadd.s32 4294967295, %s348_s12   ;;  %p314_p0 = scmp.ge.s32.totalorder %s348_s12, 1  ;;  %s348_s12 = sphi %s373_s12, %s13_s12  }
   0x2   : > { %p131_p1 = scmp.lt.s32.totalorder %s348_s12, 3 }
   0x4   : > { %p132_p2 = pnand %p314_p0, %p131_p1 }
   0x5   : > { %v154_v0 = vld [vmem:[%s413_s1] sm:$0xf] (!%p132_p2)  ;;  %vm159_vm0 = vcmask (!%p132_p2), 1043456   ;;  %p149_p3 = scmp.lt.s32.totalorder (!%p132_p2), %s379_s13, 1  ;;  %v350_v1 = vmov (!%p132_p2), 0.0   ;;  %vm351_vm1 = vmmov (!%p132_p2), 0  }
   0x6   : > { %135 = sbr.rel (%p132_p2) target bundleno = 283 (0x11b), region = 32  ;;  %324 = vmatprep.subr.mxu0 (!%p132_p2), %v350_v1  ;;  %326 = vmatprep.mubr.msk.f32.mxu0 (!%p132_p2), %vm351_vm1, %v350_v1  ;;  %vm155_vm2 = vcmask (!%p132_p2), 31744   ;;  %p318_p4 = scmp.ne.s32.totalorder (!%p132_p2), %s379_s13, 0 }
   0x7   : > { %325 = vmatpush3.msk.msra.mxu0 (!%p132_p2), %vm159_vm0, %v154_v0 }
   0xd   : > { %s150_s16 = scalar_select %p149_p3, %s379_s13, 1 }
   0xe   : > { %vm237_vm3 = vcmask (!%p318_p4), 122880   ;;  %v352_v5 = vmov (!%p318_p4), 0.0  }
   0xf   : > { %s315_s17 = sshll.u32 %s150_s16, 3  ;;  %238 = vst.msk [vmem:[#allocation2] sm:$0x1] (!%p318_p4), %vm237_vm3, %v352_v5  ;;  %239 = vst.msk [vmem:[#allocation3] sm:$0x1] (!%p318_p4), %vm237_vm3, %v352_v5 }
  0x10   : > { %s152_s20 = scalar_lea.vmem %s412_s0, %s315_s17 }
  0x11   : > { %v153_v2 = vld [vmem:[%s152_s20] sm:$0xff] }
  0x12   : > { %327 = vmatmul.mubr.msk.f32.vlgmr.msra.gmra.mrb[0].mxu0 %vm155_vm2, %v153_v2 }
  0xe0   : > { %236 = sbr.rel (%p318_p4) target bundleno = 231 (0xe7), region = 36 }
  0xe5   : > { %v229_v3 = vpop.f32.mrb[0].mxu0 }
  0xe6   : > { %v328_v4 = vpop.f32.mrb[1].mxu0 }
  0xe7 PF: > { %vm241_vm4 = vcmask 130048   ;;  %v253_v6 = vmul.f32 %v229_v3, %v229_v3  ;;  %v240_v18 = vld [vmem:[#allocation2] sm:$0x1]  ;;  %v252_v21 = vld [vmem:[#allocation3] sm:$0x1]  ;;  %vm250_vm5 = vcmask 122880  }
  0xe8   : > { %v242_v7 = vsel %vm241_vm4, %v229_v3, 0.0  ;;  %p319_p5 = scmp.ne.s32.totalorder %s379_s13, 1 }
  0xe9   : > { %v243_v8 = vrot.slane %v242_v7, 4  ;;  %v254_v9 = vsel %vm241_vm4, %v253_v6, 0.0  ;;  %v274_v33 = vld [vmem:[%s414_s2] sm:$0x1] (!%p319_p5)  ;;  %v278_v36 = vld [vmem:[%s414_s2 + $0x1] sm:$0x1] (!%p319_p5) }
  0xea   : > { %v255_v10 = vrot.slane %v254_v9, 4 }
  0xeb   : > { %v244_v11 = vadd.f32 %v243_v8, %v242_v7 }
  0xec   : > { %v256_v12 = vadd.f32 %v255_v10, %v254_v9 }
  0xed   : > { %v245_v13 = vrot.slane %v244_v11, 2 }
  0xee   : > { %v257_v14 = vrot.slane %v256_v12, 2 }
  0xef   : > { %v246_v15 = vadd.f32 %v245_v13, %v244_v11 }
  0xf0   : > { %v258_v16 = vadd.f32 %v257_v14, %v256_v12 }
  0xf1   : > { %v247_v17 = vrot.slane %v246_v15, 1 }
  0xf2   : > { %v259_v19 = vrot.slane %v258_v16, 1  ;;  %266 = sbr.rel (%p319_p5) target bundleno = 283 (0x11b), region = 40 }
  0xf3   : > { %v248_v20 = vadd.f32 %v247_v17, %v246_v15 }
  0xf4   : > { %v260_v22 = vadd.f32 %v259_v19, %v258_v16 }
  0xf5   : > { %v249_v23 = vadd.f32 %v248_v20, %v240_v18 }
  0xf6   : > { %v261_v24 = vadd.f32 %v260_v22, %v252_v21 }
  0xf7   : > { %251 = vst.msk [vmem:[#allocation2] sm:$0x1] %vm250_vm5, %v249_v23 }
  0xf8   : > { %262 = vst.msk [vmem:[#allocation3] sm:$0x1] %vm250_vm5, %v261_v24 }
  0xfe   : > { %v267_v25 = vld [vmem:[#allocation2] sm:$0x1] }
  0xff   : > { %v269_v26 = vld [vmem:[#allocation3] sm:$0x1]  ;;  %v268_v27 = vmul.f32 0.0625, %v267_v25 }
 0x100   : > { %v270_v28 = vmul.f32 0.0625, %v269_v26 }
 0x101   : > { %v271_v29 = vmul.f32 %v268_v27, %v268_v27 }
 0x103   : > { %v272_v30 = vsub.f32 %v270_v28, %v271_v29 }
 0x105   : > { %v273_v31 = vmax.f32 %v272_v30, 0.0 }
 0x107   : > { %v275_v32 = vadd.f32 1e-05, %v273_v31 }
 0x109   : > { %340 = vrsqrt.f32 %v275_v32 }
 0x113   : > { %v341_v34 = vpop.eup %340 }
 0x114   : > { %v277_v35 = vmul.f32 %v341_v34, %v274_v33 }
 0x116   : > { %281 = vst.msk [vmem:[%s415_s3] sm:$0x1] %vm250_vm5, %v277_v35  ;;  %v279_v37 = vmul.f32 %v277_v35, %v268_v27 }
 0x118   : > { %v280_v38 = vsub.f32 %v278_v36, %v279_v37 }
 0x11a   : > { %282 = vst.msk [vmem:[%s415_s3 + $0x1] sm:$0x1] %vm250_vm5, %v280_v38 }
 0x11b PF: > { %s13_s12 = sadd.s32 1, %s348_s12  }
 0x11c   : > { %p10_p6 = scmp.ge.s32.totalorder %s13_s12, 4  }
 0x11e   :  { %12 = sbr.rel (!%p10_p6) target bundleno = 1 (0x1), region = 66 }

// kernel: multi_feature_embedding.3
= control target key start
LH: loop header
LB: loop body
LE: loop exit
PB: predicated region body
PF: predicated region fallthrough
CT: control target
= control target key end

     0   :  { %14 = vsyncpa [#allocation3], 0  ;;  %s1144_s0 = inlined_call_operand.vmem [shape: s32[16,1], index: 0, kind: input, shape index: {}]   ;;  %s1145_s1 = inlined_call_operand.vmem [shape: s32[16,1], index: 1, kind: input, shape index: {}]   ;;  %s1146_s2 = inlined_call_operand.vmem [shape: f32[16,4], index: 2, kind: input, shape index: {}]   ;;  %s1147_s3 = inlined_call_operand.vmem [shape: bf16[16,32], index: 3, kind: input, shape index: {}]   ;;  %s1148_s4 = inlined_call_operand.vmem [shape: bf16[32,32], index: 4, kind: input, shape index: {}]   ;;  %s1149_s5 = inlined_call_operand.vmem [shape: f32[4,16], index: 5, kind: input, shape index: {}]   ;;  %s1150_s6 = inlined_call_operand.vmem [shape: f32[16,32], index: 6, kind: input, shape index: {}]   ;;  %s1151_s7 = inlined_call_operand.vmem [shape: f32[2,16], index: 7, kind: input, shape index: {}]   ;;  %s1152_s8 = inlined_call_operand.vmem [shape: f32[1,32], index: 8, kind: input, shape index: {}]   ;;  %s1153_s9 = inlined_call_operand.hbm [shape: f32[16,32], index: 9, kind: output, shape index: {}]  }
   0x1   :  { %16 = vsyncpa [#allocation3 + $0x1], 0  ;;  %s998_s30 = smov 0   ;;  %s1000_s10 = smov 0  }
   0x2   :  { %s1002_s11 = smov 0   ;;  %s1004_s12 = smov 0  }
   0x3 LB: > { %s1019_s13 = sadd.s32 4294967295, %s941_s12   ;;  %s767_s14 = sadd.s32 4294967294, %s941_s12   ;;  %s941_s12 = sphi %s1004_s12, %s1159_s12   ;;  %s937_s11 = sphi %s1002_s11, %s1158_s11   ;;  %s933_s10 = sphi %s1000_s10, %s1157_s10   ;;  %s929_s30 = sphi %s998_s30, %s1156_s30  }
   0x4   : > { %s1023_s15 = sadd.s32 1, %s941_s12   ;;  %s233_s16 = sadd.s32 1, %s937_s11 }
   0x5   : > { %s230_s17 = ssub.s32 %s941_s12, %s1023_s15  ;;  %p243_p0 = scmp.ne.s32.totalorder %s937_s11, %s933_s10 }
   0x6   : > { %p231_p1 = scmp.eq.s32.totalorder %s230_s17, 0  ;;  %p244_p2 = scmp.eq.s32.totalorder %s1019_s13, 1 }
   0x7   : > { %p249_p3 = scmp.ne.s32.totalorder %s933_s10, %s929_s30  ;;  %p250_p4 = scmp.eq.s32.totalorder %s767_s14, 1 }
   0x8   : > { %s1034_s18 = scalar_select %p231_p1, %s937_s11, %s233_s16  }
   0x9   : > { %p1036_p5 = por %p244_p2, %p243_p0  ;;  %p1040_p6 = por %p250_p4, %p249_p3 }
   0xa   : > { %p770_p7 = scmp.ge.s32.totalorder %s941_s12, 1  ;;  %p307_p8 = scmp.lt.s32.totalorder %s941_s12, 3 }
   0xc   : > { %p308_p9 = pnand %p770_p7, %p307_p8 }
   0xd   : > { %p350_p10 = scmp.lt.s32.totalorder (!%p308_p9), %s1019_s13, 1  ;;  %v943_v0 = vmov (!%p308_p9), 0   ;;  %v944_v1 = vmov (!%p308_p9), 0.0   ;;  %v876_v3 = vld [vmem:[%s1147_s3] sm:$0xff] (!%p308_p9)   ;;  %vm945_vm0 = vmmov (!%p308_p9), 0   ;;  %v878_v6 = vld [vmem:[%s1148_s4 + $0x8] sm:$0xff] (!%p308_p9)   ;;  %v364_v7 = vlaneseq (!%p308_p9) }
   0xe   : > { %311 = sbr.rel (%p308_p9) target bundleno = 612 (0x264), region = 56  ;;  %875 = vset.pattern.permute.xlu0 (!%p308_p9), %v943_v0  ;;  %810 = vmatprep.subr.bf16.mxu1 (!%p308_p9), %v944_v1  ;;  %v877_v4 = vld [vmem:[%s1148_s4] sm:$0xff] (!%p308_p9)   ;;  %vm449_vm2 = vcmask (!%p308_p9), 130048   ;;  %vm499_vm3 = vcmask (!%p308_p9), 1043456   ;;  %vm399_vm5 = vcmask (!%p308_p9), 261120   ;;  %vm495_vm6 = vcmask (!%p308_p9), 31744  }
   0xf   : > { %802 = vmatprep.subr.bf16.mxu0 (!%p308_p9), %v944_v1  ;;  %811 = vmatpush3.bf16.msra.mxu1 (!%p308_p9), %v876_v3  ;;  %v365_v8 = vand.u32 (!%p308_p9), 127, %v364_v7  ;;  %v494_v12 = vld [vmem:[%s1149_s5] sm:$0xf] (!%p308_p9)  ;;  %v586_v18 = vld [vmem:[%s1150_s6 + $0x8] sm:$0xff] (!%p308_p9)  ;;  %v946_v20 = vmov (!%p308_p9), 0.0|0.0   ;;  %s789_s29 = sshll.u32 (!%p308_p9), %s1019_s13, 7 }
  0x10   : > { %803 = vmatpush3.bf16.msra.mxu0 (!%p308_p9), %v877_v4  ;;  %816 = vmatprep.subr.mxu1 (!%p308_p9), %v944_v1  ;;  %v585_v17 = vld [vmem:[%s1150_s6] sm:$0xff] (!%p308_p9) }
  0x11   : > { %812 = vmatprep.mubr.msk.bf16.mxu1 (!%p308_p9), %vm945_vm0, %v944_v1  ;;  %804 = vmatprep.subr.bf16.mxu0 (!%p308_p9), %v944_v1  ;;  %v829_v19 = vpack.c.bf16 (!%p308_p9), %v586_v18, %v585_v17  ;;  %v784_v29 = vld [vmem:[%s1151_s7] ss:$0 sm:$0xff] (!%p308_p9)  ;;  %v785_v32 = vld [vmem:[%s1151_s7 + $0x1] ss:$0 sm:$0xff] (!%p308_p9) }
  0x12   : > { %806 = vmatprep.mubr.msk.bf16.mxu0 (!%p308_p9), %vm945_vm0, %v944_v1  ;;  %v787_v37 = vld [vmem:[%s1152_s8] ss:$0 sm:$0xff] (!%p308_p9) }
  0x14   : > { %805 = vmatpush3.bf16.msra.mxu0 (!%p308_p9), %v878_v6 }
  0x15   : > { %s351_s21 = scalar_select %p350_p10, %s1019_s13, 1 }
  0x16   : > { %s947_s13 = smov [#allocation2]  }
  0x17   : > { %s1048_s22 = sshll.u32 %s351_s21, 3  ;;  %s1101_s21 = scalar_lea.hbm %s1153_s9, %s789_s29 }
  0x18   : > { %s353_s25 = scalar_lea.vmem %s1144_s0, %s1048_s22  ;;  %s357_s28 = scalar_lea.vmem %s1145_s1, %s1048_s22 }
  0x19   : > { %v363_v2 = vld [vmem:[%s353_s25] sm:$0xff]  ;;  %s347_s25 = sand.u32 1, %s933_s10  }
  0x1a   : > { %367 = vperm.xlu0 %875, %v363_v2   ;;  %v375_v5 = vld [vmem:[%s357_s28] sm:$0xff]  ;;  %s361_s28 = scalar_lea.vmem %s1146_s2, %s1048_s22  ;;  %s771_s26 = sshll.u32 %s347_s25, 3 }
  0x1b   : > { %v493_v16 = vld [vmem:[%s361_s28] sm:$0xff]  ;;  %s349_s14 = scalar_lea.vmem [#allocation2], %s771_s26  ;;  %s671_s23 = scalar_lea.sflag [#allocation3], %s347_s25 }
  0x1c   : > { %s684_s16 = sshll.u32 %s349_s14, 4  ;;  %s883_s26 = sshll.u32 %s947_s13, 4  ;;  %s1103_s16 = int_to_ptr.vmem [resolvable:$true] %s684_s16  ;;  %s884_s26 = int_to_ptr.vmem [resolvable:$false] %s883_s26 }
  0x1d   : > { %s879_s24 = scalar_lea.vmem %s1103_s16, 128  ;;  %s885_s27 = scalar_lea.vmem %s884_s26, 256 }
  0x1e   : > { %377 = vperm.xlu0 %875, %v375_v5   ;;  %p880_p11 = scmp.ne.s32.totalorder %s1103_s16, %s879_s24  ;;  %p886_p0 = scmp.lt.s32.totalorder %s1103_s16, %s884_s26 }
  0x1f   : > { %p887_p1 = scmp.lt.s32.totalorder %s885_s27, %s879_s24 }
  0x20   : > { %p881_p12 = pnand %p880_p11, %p1036_p5 }
  0x21   : > { %p888_p2 = por %p887_p1, %p886_p0 }
  0x22   : > { %p882_p13 = pneg %p881_p12 }
  0x24   : > { %p889_p3 = pnand %p888_p2, %p882_p13 }
  0x99   : > { %v368_v9 = vpop.permute.xlu0 %367 }
  0x9a   : > { %vm369_vm1 = vcmp.eq.s32.totalorder %v368_v9, %v365_v8 }
  0x9b   : > { %v775_v10 = vsel %vm369_vm1, 1.0, %v944_v1 }
  0x9c   : > { %v372_v11 = vpack.c.bf16 %v775_v10, %v775_v10 }
  0x9d   : > { %v378_v13 = vpop.permute.xlu0 %377 }
  0x9e   : > { %vm379_vm4 = vcmp.eq.s32.totalorder %v378_v13, %v365_v8  ;;  %813 = vmatmul.mubr.msk.bf16.vlgmr.msra.gmra.mrb[0].mxu1 %vm449_vm2, %v372_v11 }
  0x9f   : > { %v776_v14 = vsel %vm379_vm4, 1.0, %v944_v1  ;;  %817 = vmatpush3.msk.msra.mxu1 %vm499_vm3, %v494_v12  ;;  %818 = vmatprep.mubr.msk.f32.mxu1 %vm945_vm0, %v944_v1 }
  0xa0   : > { %v382_v15 = vpack.c.bf16 %v776_v14, %v776_v14  ;;  %828 = vmatprep.subr.bf16.mxu1 %v946_v20 }
  0xa2   : > { %807 = vmatmul.mubr.msk.bf16.vlgmr.msra.gmra.mrb[0].mxu0 %vm399_vm5, %v382_v15 }
  0xa6   : > { %819 = vmatmul.mubr.msk.f32.vlgmr.msra.gmra.mrb[4].mxu1 %vm495_vm6, %v493_v16 }
  0xa7   : > { %825 = vmatprep.mubr.msk.f32.mxu1 %vm945_vm0, %v944_v1  ;;  %830 = vmatpush3.bf16.msra.mxu1 %v829_v19 }
 0x171   : > { %v487_v21 = vpop.f32.mrb[0].mxu1 }
 0x172   : > { %v814_v22 = vpop.f32.mrb[1].mxu1 }
 0x173   : > { %v490_v23 = vpop.f32.mrb[2].mxu1 }
 0x174   : > { %v815_v24 = vpop.f32.mrb[3].mxu1 }
 0x175   : > { %v437_v25 = vpop.f32.mrb[0].mxu0 }
 0x176   : > { %v488_v26 = vadd.f32 %v487_v21, %v437_v25  ;;  %v808_v27 = vpop.f32.mrb[1].mxu0 }
 0x177   : > { %v440_v28 = vpop.f32.mrb[2].mxu0 }
 0x178   : > { %v809_v30 = vpop.f32.mrb[3].mxu0 }
 0x179   : > { %v569_v31 = vpop.f32.mrb[4].mxu1 }
 0x17a   : > { %v578_v33 = vmul.f32 %v784_v29, %v569_v31  ;;  %v820_v34 = vpop.f32.mrb[5].mxu1 }
 0x17c   : > { %v584_v35 = vadd.f32 %v785_v32, %v578_v33 }
 0x17e   : > { %826 = vmatmul.mubr.msk.f32.vlgmr.msra.gmra.mrb[6].mxu1 %vm449_vm2, %v584_v35 }
 0x251   : > { %v656_v36 = vpop.f32.mrb[6].mxu1 }
 0x252   : > { %v660_v38 = vadd.f32 %v656_v36, %v488_v26  ;;  %v827_v39 = vpop.f32.mrb[7].mxu1 }
 0x254   : > { %v668_v40 = vadd.f32 %v787_v37, %v660_v38 }
 0x256   : > { %669 = vst.msk [vmem:[%s349_s14] sm:$0xff] %vm399_vm5, %v668_v40 }
 0x257   : > { %892 = shalt.err (!%p889_p3)
}
 0x258   : > { %s893_s25 = scalar_lea.hbm %s1101_s21, 128  ;;  %s897_s14 = scalar_lea.hbm %s1153_s9, 256 }
 0x259   : > { %p894_p4 = scmp.ne.s32.totalorder %s1101_s21, %s893_s25  ;;  %p898_p9 = scmp.lt.u32.totalorder %s1101_s21, %s1153_s9 }
 0x25a   : > { %p899_p10 = scmp.lt.u32.totalorder %s897_s14, %s893_s25  ;;  %p901_p12 = scmp.lt.u32.totalorder %s893_s25, %s1101_s21 }
 0x25b   : > { %p895_p7 = pnand %p894_p4, %p1036_p5 }
 0x25c   : > { %p900_p11 = por %p899_p10, %p898_p9 }
 0x25d   : > { %p896_p8 = pneg %p895_p7 }
 0x25e   : > { %p902_p13 = por %p901_p12, %p900_p11 }
 0x260   : > { %p903_p0 = pnand %p902_p13, %p896_p8 }
 0x262   : > { %906 = shalt.err (!%p903_p0)
}
 0x263   : > { %832 = dma.vmem_to_hbm [thread:$0]  (%p1036_p5), %s1103_s16, 128, %s1101_s21, %s671_s23  }
 0x264 PF: > { %p838_p1 = scmp.ge.s32.totalorder %s941_s12, 2  ;;  %s696_s24 = sand.u32 1, %s929_s30  }
 0x265   : > { %s697_s13 = scalar_lea.sflag [#allocation3], %s696_s24 }
 0x266   : > { %p835_p2 = pnand %p838_p1, %p1040_p6 }
 0x268   : > { %924 = dma.done.wait (!%p835_p2), %s697_s13, 128  }
 0x269   : > { %926 = vsyncadd (!%p835_p2), %s697_s13, 4294967168  ;;  %p19_p3 = scmp.ge.s32.totalorder %s1023_s15, 4   ;;  %s1156_s30 = smov %s933_s10 }
 0x26a   : > { %s1157_s10 = smov %s937_s11  ;;  %s1158_s11 = smov %s1034_s18 }
 0x26b   : > { %s1159_s12 = smov %s1023_s15  ;;  %21 = sbr.rel (!%p19_p3) target bundleno = 3 (0x3), region = 97 }
 0x272   :  { %702 = vsyncpa [#allocation3], 1 }
 0x273   :  { %704 = vsyncpa [#allocation3 + $0x1], 1 }

</bundles_post_ra>
